<compile_context>
chip_gen: v7x
topology: tpu7x:2x2x1
jax: 0.10.0
libtpu: 0.0.40
codegen_flags: <defaults>
</compile_context>

<pallas_src>
import functools

import jax
import jax.numpy as jnp
from jax import lax
from jax.experimental import pallas as pl
from jax.experimental.pallas import tpu as pltpu


def _focal_ce_partial_kernel(logits_ref, targets_ref, col_ids_ref, out_ref, *,
                             n_total):
    # logits_ref : (TN, C) native dtype, VMEM
    # targets_ref: (TN, 1) int32, VMEM
    # col_ids_ref: (1, C)  int32, VMEM (constant block, same for every step)
    # out_ref    : (1, 8, 128) f32, VMEM — per-tile partial CE sum (broadcast)
    i = pl.program_id(0)

    logits = logits_ref[...].astype(jnp.float32)                 # (TN, C)
    targets = targets_ref[...]                                   # (TN, 1)
    tn, _ = logits.shape

    # numerically stable log-softmax pieces; row_max cancels out of ce_i below
    row_max = jnp.max(logits, axis=-1, keepdims=True)            # (TN, 1)
    shifted = logits - row_max                                    # (TN, C)
    sumexp = jnp.sum(jnp.exp(shifted), axis=-1, keepdims=True)    # (TN, 1)

    # gather shifted logit at the target class via one-hot compare against the
    # precomputed class-index row (no per-step (TN, C) iota).
    onehot = col_ids_ref[...] == targets                          # (TN, C)
    tgt_shifted = jnp.sum(jnp.where(onehot, shifted, 0.0),
                          axis=-1, keepdims=True)                 # (TN, 1)

    ce_i = jnp.log(sumexp) - tgt_shifted                          # per-sample CE

    # mask rows past the true batch size on a ragged last tile
    row_ids = i * tn + lax.broadcasted_iota(jnp.int32, (tn, 1), 0)
    ce_i = jnp.where(row_ids < n_total, ce_i, 0.0)

    # one scalar partial per grid step, written lane-dense as an (8, 128) slab
    partial = jnp.sum(ce_i)
    out_ref[...] = jnp.full(out_ref.shape, partial, jnp.float32)


def focal_loss(inputs, targets, alpha=1.0, gamma=2.0, block_n=None):
    """inputs: (N, C) float logits (f32 or bf16 — bf16 halves HBM traffic and
    the kernel upcasts in VMEM); targets: (N,) int class indices.

    Returns a scalar f32 focal loss where the focal modulation is applied to
    the MEAN cross-entropy (matching the original nn.Module, not per-sample).
    """
    n, c = inputs.shape
    itemsize = jnp.dtype(inputs.dtype).itemsize
    # sublane packing multiple: 8 for 4-byte, 16 for bf16, 32 for 1-byte dtypes
    sub = max(8, 32 // max(itemsize, 1))

    if block_n is None:
        # ~2 MiB of logits per tile (x2 double-buffering): sized by bytes, not
        # rows, which keeps small-C cases at the HBM roofline too.
        block_n = max(sub, (2 << 20) // max(c * itemsize, 1))
    # v7x guard (64 MiB physical VMEM): cap the f32 working set of each
    # (block_n, C) intermediate at ~6 MiB regardless of caller overrides.
    max_rows = max(sub, (6 << 20) // max(c * 4, 1))
    block_n = min(int(block_n), max_rows)

    if block_n >= n:
        block_n = n                                # single tile == full dim (legal)
    else:
        block_n = max(sub, (block_n // sub) * sub)  # sublane-packing multiple

    grid_n = pl.cdiv(n, block_n)
    targets2d = targets.astype(jnp.int32).reshape(n, 1)
    col_ids = jnp.arange(c, dtype=jnp.int32).reshape(1, c)

    # explicit scoped-VMEM budget: 2x double-buffered logits + targets + a few
    # f32 (block_n, C) temps + margin; >= 32 MiB (raises v5e's 16 MiB default),
    # <= 48 MiB (safely under v7x's 64 MiB physical VMEM).
    need = (2 * block_n * c * itemsize + 2 * block_n * 4
            + 4 * block_n * c * 4 + (2 << 20))
    vmem_limit = int(min(max(need, 32 << 20), 48 << 20))

    kernel = functools.partial(_focal_ce_partial_kernel, n_total=n)

    partials = pl.pallas_call(
        kernel,
        out_shape=jax.ShapeDtypeStruct((grid_n, 8, 128), jnp.float32),
        grid=(grid_n,),
        in_specs=[
            pl.BlockSpec((block_n, c), lambda i: (i, 0)),   # logits tile
            pl.BlockSpec((block_n, 1), lambda i: (i, 0)),   # targets tile
            pl.BlockSpec((1, c), lambda i: (0, 0)),         # class-index row
        ],
        out_specs=pl.BlockSpec((1, 8, 128), lambda i: (i, 0, 0)),
        compiler_params=pltpu.CompilerParams(
            dimension_semantics=("parallel",),               # independent tiles
            vmem_limit_bytes=vmem_limit),
        cost_estimate=pl.CostEstimate(
            flops=6 * n * c,
            transcendentals=n * c,
            bytes_accessed=n * c * itemsize + n * 4 + c * 4 + grid_n * 8 * 128 * 4),
    )(inputs, targets2d, col_ids)

    # tiny scalar epilogue in the wrapper (grid_n values): mean CE + focal.
    ce = jnp.sum(partials[:, 0, 0]) / float(n)
    pt = jnp.exp(-ce)
    return (float(alpha) * (1.0 - pt) ** float(gamma) * ce).astype(jnp.float32)


def _reference_focal_loss(inputs, targets, alpha=1.0, gamma=2.0):
    # pure-JAX reference matching the PyTorch module (mean CE, then focal)
    logp = jax.nn.log_softmax(inputs.astype(jnp.float32), axis=-1)
    ce_i = -jnp.take_along_axis(logp, targets[:, None].astype(jnp.int32), axis=-1)[:, 0]
    ce = jnp.mean(ce_i)
    pt = jnp.exp(-ce)
    return alpha * (1.0 - pt) ** gamma * ce


if __name__ == "__main__":
    key = jax.random.PRNGKey(0)
    k1, k2 = jax.random.split(key)

    # small classification batch of logits; N=56 with block_n=16 exercises the
    # multi-step parallel grid, per-tile partial outputs, and ragged-tail masking.
    N, C = 56, 128
    logits = jax.random.normal(k1, (N, C), dtype=jnp.float32)
    targets = jax.random.randint(k2, (N,), 0, C, dtype=jnp.int32)

    loss_tiled = focal_loss(logits, targets, alpha=1.0, gamma=2.0, block_n=16)
    jax.block_until_ready(loss_tiled)

    loss_default = focal_loss(logits, targets, alpha=1.0, gamma=2.0)  # single tile
    jax.block_until_ready(loss_default)

    ref = _reference_focal_loss(logits, targets, alpha=1.0, gamma=2.0)
    assert jnp.allclose(loss_tiled, ref, rtol=1e-5, atol=1e-6), (loss_tiled, ref)
    assert jnp.allclose(loss_default, ref, rtol=1e-5, atol=1e-6), (loss_default, ref)

    print("KERNEL_OK")
</pallas_src>

<mosaic_0001>
module attributes {stable_mosaic.version = 11 : i64} {
  func.func @_focal_ce_partial_kernel(%arg0: i32, %arg1: memref<16x128xf32, #tpu.memory_space<vmem>>, %arg2: memref<16x1xi32, #tpu.memory_space<vmem>>, %arg3: memref<1x128xi32, #tpu.memory_space<vmem>>, %arg4: memref<1x8x128xf32, #tpu.memory_space<vmem>>) attributes {dimension_semantics = [#tpu.dimension_semantics<parallel>], iteration_bounds = array<i64: 4>, scalar_prefetch = 0 : i64, scratch_operands = 0 : i64, tpu.core_type = #tpu.core_type<tc>, window_params = [{transform_indices = @transform_0, window_bounds = array<i64: 16, 128>}, {transform_indices = @transform_1, window_bounds = array<i64: 16, 1>}, {pipeline_mode = #tpu.pipeline_mode<synchronous>, transform_indices = @transform_2, window_bounds = array<i64: 1, 128>}, {transform_indices = @transform_3, window_bounds = array<i64: 1, 8, 128>}]} {
    %c0 = arith.constant 0 : index
    %c0_0 = arith.constant 0 : index
    %0 = vector.load %arg1[%c0, %c0_0] : memref<16x128xf32, #tpu.memory_space<vmem>>, vector<16x128xf32>
    %c0_1 = arith.constant 0 : index
    %c0_2 = arith.constant 0 : index
    %1 = vector.load %arg2[%c0_1, %c0_2] : memref<16x1xi32, #tpu.memory_space<vmem>>, vector<16x1xi32>
    %cst = arith.constant dense<0xFF800000> : vector<16xf32>
    %2 = vector.multi_reduction <maximumf>, %0, %cst [1] : vector<16x128xf32> to vector<16xf32>
    %3 = vector.shape_cast %2 : vector<16xf32> to vector<16x1xf32>
    %4 = vector.broadcast %3 : vector<16x1xf32> to vector<16x128xf32>
    %5 = arith.subf %0, %4 : vector<16x128xf32>
    %6 = math.exp %5 : vector<16x128xf32>
    %cst_3 = arith.constant dense<0.000000e+00> : vector<16xf32>
    %7 = vector.multi_reduction <add>, %6, %cst_3 [1] : vector<16x128xf32> to vector<16xf32>
    %8 = vector.shape_cast %7 : vector<16xf32> to vector<16x1xf32>
    %c0_4 = arith.constant 0 : index
    %c0_5 = arith.constant 0 : index
    %9 = vector.load %arg3[%c0_4, %c0_5] : memref<1x128xi32, #tpu.memory_space<vmem>>, vector<1x128xi32>
    %10 = vector.broadcast %9 : vector<1x128xi32> to vector<16x128xi32>
    %11 = vector.broadcast %1 : vector<16x1xi32> to vector<16x128xi32>
    %12 = arith.cmpi eq, %10, %11 : vector<16x128xi32>
    %cst_6 = arith.constant 0.000000e+00 : f32
    %13 = vector.broadcast %cst_6 : f32 to vector<16x128xf32>
    %14 = arith.select %12, %5, %13 : vector<16x128xi1>, vector<16x128xf32>
    %cst_7 = arith.constant dense<0.000000e+00> : vector<16xf32>
    %15 = vector.multi_reduction <add>, %14, %cst_7 [1] : vector<16x128xf32> to vector<16xf32>
    %16 = vector.shape_cast %15 : vector<16xf32> to vector<16x1xf32>
    %17 = math.log %8 : vector<16x1xf32>
    %18 = arith.subf %17, %16 : vector<16x1xf32>
    %c16_i32 = arith.constant 16 : i32
    %19 = arith.muli %arg0, %c16_i32 : i32
    %20 = tpu.iota {dimensions = array<i32: 0>} : vector<16x1xi32>
    %21 = vector.broadcast %19 : i32 to vector<16x1xi32>
    %22 = arith.addi %21, %20 : vector<16x1xi32>
    %c56_i32 = arith.constant 56 : i32
    %23 = vector.broadcast %c56_i32 : i32 to vector<16x1xi32>
    %24 = arith.cmpi slt, %22, %23 : vector<16x1xi32>
    %cst_8 = arith.constant 0.000000e+00 : f32
    %25 = vector.broadcast %cst_8 : f32 to vector<16x1xf32>
    %26 = arith.select %24, %18, %25 : vector<16x1xi1>, vector<16x1xf32>
    %27 = vector.shape_cast %26 : vector<16x1xf32> to vector<1x16x1xf32>
    %cst_9 = arith.constant dense<0.000000e+00> : vector<1xf32>
    %28 = vector.multi_reduction <add>, %27, %cst_9 [1, 2] : vector<1x16x1xf32> to vector<1xf32>
    %29 = vector.shape_cast %28 : vector<1xf32> to vector<1x1x1xf32>
    %30 = vector.extract %29[0, 0, 0] : f32 from vector<1x1x1xf32>
    %31 = vector.broadcast %30 : f32 to vector<1x8x128xf32>
    %c0_10 = arith.constant 0 : index
    %c0_11 = arith.constant 0 : index
    %c0_12 = arith.constant 0 : index
    %32 = vector.load %arg4[%c0_10, %c0_11, %c0_12] : memref<1x8x128xf32, #tpu.memory_space<vmem>>, vector<1x8x128xf32>
    tpu.vector_store %arg4[%c0_10, %c0_11, %c0_12], %31 {strides = array<i32>} : memref<1x8x128xf32, #tpu.memory_space<vmem>>, vector<1x8x128xf32>,
    return
  }
  func.func @transform_0(%arg0: i32) -> (i32, i32) {
    %c0_i32 = arith.constant 0 : i32
    %c0_i32_0 = arith.constant 0 : i32
    return %arg0, %c0_i32 : i32, i32
  }
  func.func @transform_1(%arg0: i32) -> (i32, i32) {
    %c0_i32 = arith.constant 0 : i32
    %c0_i32_0 = arith.constant 0 : i32
    return %arg0, %c0_i32 : i32, i32
  }
  func.func @transform_2(%arg0: i32) -> (i32, i32) {
    %c0_i32 = arith.constant 0 : i32
    %c0_i32_0 = arith.constant 0 : i32
    %c0_i32_1 = arith.constant 0 : i32
    return %c0_i32, %c0_i32_0 : i32, i32
  }
  func.func @transform_3(%arg0: i32) -> (i32, i32, i32) {
    %c0_i32 = arith.constant 0 : i32
    %c0_i32_0 = arith.constant 0 : i32
    %c0_i32_1 = arith.constant 0 : i32
    return %arg0, %c0_i32, %c0_i32_0 : i32, i32, i32
  }
}

</mosaic_0001>

<bundles_post_ra>
// kernel: tpu_custom_call.1
= control target key start
LH: loop header
LB: loop body
LE: loop exit
PB: predicated region body
PF: predicated region fallthrough
CT: control target
= control target key end

     0   :  { %8 = vsyncpa [#allocation3], 0  ;;  %s646_s0 = inlined_call_operand.vmem [shape: f32[56,128], index: 0, kind: input, shape index: {}]   ;;  %s647_s1 = inlined_call_operand.vmem [shape: s32[56,1], index: 1, kind: input, shape index: {}]   ;;  %s648_s2 = inlined_call_operand.vmem [shape: s32[1,128], index: 2, kind: input, shape index: {}]   ;;  %s649_s3 = inlined_call_operand.hbm [shape: f32[4,8,128], index: 3, kind: output, shape index: {}]  }
   0x1   :  { %10 = vsyncpa [#allocation3 + $0x1], 0  ;;  %s540_s12 = smov 0   ;;  %s542_s13 = smov 0  }
   0x2   :  { %s544_s14 = smov 0   ;;  %s546_s15 = smov 0  }
   0x3 LB: > { %s561_s16 = sadd.s32 4294967295, %s516_s15   ;;  %s387_s17 = sadd.s32 4294967294, %s516_s15   ;;  %s516_s15 = sphi %s546_s15, %s655_s15   ;;  %s512_s14 = sphi %s544_s14, %s654_s14   ;;  %s508_s13 = sphi %s542_s13, %s653_s13   ;;  %s504_s12 = sphi %s540_s12, %s652_s12  }
   0x4   : > { %s565_s18 = sadd.s32 1, %s516_s15   ;;  %s96_s19 = sadd.s32 1, %s512_s14 }
   0x5   : > { %s93_s20 = ssub.s32 %s516_s15, %s565_s18  ;;  %p106_p0 = scmp.ne.s32.totalorder %s512_s14, %s508_s13 }
   0x6   : > { %p94_p1 = scmp.eq.s32.totalorder %s93_s20, 0  ;;  %p107_p2 = scmp.eq.s32.totalorder %s561_s16, 3 }
   0x7   : > { %p112_p3 = scmp.ne.s32.totalorder %s508_s13, %s504_s12  ;;  %p113_p4 = scmp.eq.s32.totalorder %s387_s17, 3 }
   0x8   : > { %s576_s21 = scalar_select %p94_p1, %s512_s14, %s96_s19  }
   0x9   : > { %p578_p5 = por %p107_p2, %p106_p0  ;;  %p582_p6 = por %p113_p4, %p112_p3 }
   0xa   : > { %p390_p7 = scmp.ge.s32.totalorder %s516_s15, 1  ;;  %p168_p8 = scmp.lt.s32.totalorder %s516_s15, 5 }
   0xc   : > { %p169_p9 = pnand %p390_p7, %p168_p8 }
   0xd   : > { %s392_s24 = sshll.u32 (!%p169_p9), %s561_s16, 1  ;;  %v518_v0 = vmov (!%p169_p9), 0   ;;  %v396_v12 = vld [vmem:[%s648_s2] ss:$0 sm:$0xff] (!%p169_p9)  ;;  %v277_v19 = vlaneseq (!%p169_p9)  ;;  %s397_s7 = sshll.u32 (!%p169_p9), %s561_s16, 4  ;;  %vm287_vm4 = vcmask (!%p169_p9), 7168  }
   0xe   : > { %172 = sbr.rel (%p169_p9) target bundleno = 566 (0x236), region = 32  ;;  %p210_p10 = scmp.lt.s32.totalorder (!%p169_p9), %s392_s24, 6  ;;  %444 = vset.pattern.permute.xlu1 (!%p169_p9), %v518_v0  ;;  %445 = vset.pattern.permute.xlu0 (!%p169_p9), %v518_v0  ;;  %v280_v22 = vstv (!%p169_p9), %s397_s7 }
   0xf   : > { %v278_v21 = vshrl.u32 (!%p169_p9), %v277_v19, 7  ;;  %s202_s8 = sand.u32 (!%p169_p9), 1, %s508_s13   ;;  %s399_s17 = sshll.u32 (!%p169_p9), %s561_s16, 7 }
  0x10   : > { %s391_s9 = sshll.u32 (!%p169_p9), %s202_s8, 3  ;;  %s303_s26 = scalar_lea.sflag (!%p169_p9), [#allocation3], %s202_s8 }
  0x11   : > { %v279_v23 = vadd.s32 (!%p169_p9), 8, %v278_v21  ;;  %v281_v25 = vadd.s32 (!%p169_p9), %v280_v22, %v278_v21  ;;  %s204_s10 = scalar_lea.vmem (!%p169_p9), [#allocation2], %s391_s9  ;;  %s519_s16 = smov (!%p169_p9), [#allocation2]  }
  0x12   : > { %s316_s11 = sshll.u32 (!%p169_p9), %s204_s10, 4  ;;  %s601_s11 = int_to_ptr.vmem [resolvable:$true] %s316_s11 }
  0x13   : > { %v282_v28 = vadd.s32 (!%p169_p9), %v280_v22, %v279_v23  ;;  %vm283_vm2 = vcmp.lt.s32.totalorder (!%p169_p9), %v281_v25, 56  ;;  %s454_s27 = scalar_lea.vmem (!%p169_p9), %s601_s11, 128 }
  0x14   : > { %p455_p11 = scmp.ne.s32.totalorder (!%p169_p9), %s601_s11, %s454_s27 }
  0x15   : > { %s657_s24 = smov (!%p210_p10, %s392_s24), 6  ;;  %vm284_vm3 = vcmp.lt.s32.totalorder %v282_v28, 56 }
  0x16   : > { %s393_s25 = sshll.u32 %s657_s24, 3  ;;  %p456_p12 = pnand %p455_p11, %p578_p5 }
  0x17   : > { %s213_s28 = scalar_lea.vmem %s646_s0, %s393_s25  ;;  %s227_s4 = scalar_lea.vmem %s647_s1, %s393_s25 }
  0x18   : > { %v233_v1 = vld [vmem:[%s213_s28] sm:$0xff]  ;;  %v234_v3 = vld [vmem:[%s213_s28 + $0x8] sm:$0xff]  ;;  %s606_s25 = scalar_lea.hbm %s649_s3, %s399_s17  ;;  %p457_p13 = pneg %p456_p12 }
  0x19   : > { %v235_v2 = vld [vmem:[%s227_s4] sm:$0xff]  ;;  %237 = vmax.xlane.f32.xlu0 %v233_v1  ;;  %v236_v4 = vld [vmem:[%s227_s4 + $0x8] sm:$0xff]  ;;  %s458_s28 = sshll.u32 %s519_s16, 4  ;;  %s459_s28 = int_to_ptr.vmem [resolvable:$false] %s458_s28 }
  0x1a   : > { %257 = vperm.xlu1 %444, %v235_v2   ;;  %s460_s29 = scalar_lea.vmem %s459_s28, 256  ;;  %p461_p0 = scmp.lt.s32.totalorder %s601_s11, %s459_s28 }
  0x1b   : > { %p462_p1 = scmp.lt.s32.totalorder %s460_s29, %s454_s27 }
  0x1d   : > { %239 = vmax.xlane.f32.xlu0 %v234_v3  ;;  %p463_p2 = por %p462_p1, %p461_p0 }
  0x1e   : > { %260 = vperm.xlu1 %444, %v236_v4  }
  0x1f   : > { %p464_p3 = pnand %p463_p2, %p457_p13 }
  0x99   : > { %v258_v11 = vpop.permute.xlu1 %257 }
  0x9a   : > { %vm262_vm0 = vcmp.eq.s32.totalorder %v396_v12, %v258_v11 }
  0x9d   : > { %v261_v14 = vpop.permute.xlu1 %260 }
  0x9e   : > { %vm263_vm1 = vcmp.eq.s32.totalorder %v396_v12, %v261_v14 }
  0xa6   : > { %v238_v5 = vpop.xlane.xlu0 %237 }
  0xa7   : > { %v241_v6 = vsub.f32 %v233_v1, %v238_v5 }
  0xa9   : > { %v243_v7 = vmul.f32 1.442695, %v241_v6  ;;  %v264_v16 = vsel %vm262_vm0, %v241_v6, 0.0 }
  0xaa   : > { %v240_v8 = vpop.xlane.xlu0 %239 }
  0xab   : > { %446 = vpow2.f32 %v243_v7  ;;  %v242_v9 = vsub.f32 %v234_v3, %v240_v8 }
  0xad   : > { %v245_v10 = vmul.f32 1.442695, %v242_v9  ;;  %v265_v17 = vsel %vm263_vm1, %v242_v9, 0.0 }
  0xaf   : > { %448 = vpow2.f32 %v245_v10 }
  0xb5   : > { %v447_v13 = vpop.eup %446 }
  0xb6   : > { %247 = vadd.xlane.f32.xlu0 %v447_v13 }
  0xb9   : > { %v449_v15 = vpop.eup %448 }
  0xba   : > { %266 = vadd.xlane.f32.xlu0 %v264_v16  ;;  %249 = vadd.xlane.f32.xlu1 %v449_v15 }
  0xbe   : > { %268 = vadd.xlane.f32.xlu0 %v265_v17 }
 0x143   : > { %v248_v18 = vpop.xlane.xlu0 %247 }
 0x144   : > { %450 = vlog2.f32 %v248_v18 }
 0x147   : > { %v250_v20 = vpop.xlane.xlu1 %249  ;;  %v267_v26 = vpop.xlane.xlu0 %266 }
 0x148   : > { %452 = vlog2.f32 %v250_v20 }
 0x14b   : > { %v269_v32 = vpop.xlane.xlu0 %268 }
 0x14e   : > { %v451_v24 = vpop.eup %450 }
 0x14f   : > { %v271_v27 = vmul.f32 0.6931472, %v451_v24 }
 0x151   : > { %v274_v29 = vsub.f32 %v271_v27, %v267_v26 }
 0x152   : > { %v453_v30 = vpop.eup %452 }
 0x153   : > { %v273_v31 = vmul.f32 0.6931472, %v453_v30  ;;  %v285_v33 = vsel %vm283_vm2, %v274_v29, 0.0 }
 0x154   : > { %v288_v36 = vsel %vm287_vm4, %v285_v33, 0.0 }
 0x155   : > { %v275_v34 = vsub.f32 %v273_v31, %v269_v32 }
 0x157   : > { %v286_v35 = vsel %vm284_vm3, %v275_v34, 0.0 }
 0x158   : > { %v289_v37 = vsel %vm287_vm4, %v286_v35, 0.0 }
 0x159   : > { %v290_v38 = vadd.f32 %v289_v37, %v288_v36 }
 0x15b   : > { %291 = vadd.xlane.f32.xlu0 %v290_v38 }
 0x1e8   : > { %v292_v39 = vpop.xlane.xlu0 %291 }
 0x1e9   : > { %v293_v40 = vrot.slane %v292_v39, 4 }
 0x1eb   : > { %v294_v41 = vadd.f32 %v293_v40, %v292_v39 }
 0x1ed   : > { %v295_v42 = vrot.slane %v294_v41, 2 }
 0x1ef   : > { %v296_v43 = vadd.f32 %v295_v42, %v294_v41 }
 0x1f1   : > { %v297_v44 = vrot.slane %v296_v43, 1 }
 0x1f3   : > { %v298_v45 = vadd.f32 %v297_v44, %v296_v43 }
 0x1f5   : > { %402 = vpush %v298_v45 }
 0x226   : > { %s403_s19 = spop %402 }
 0x227   : > { %v300_v46 = vstv %s403_s19 }
 0x228   : > { %301 = vst [vmem:[%s204_s10] sm:$0xff] %v300_v46 }
 0x229   : > { %467 = shalt.err (!%p464_p3)
}
 0x22a   : > { %s468_s30 = scalar_lea.hbm %s606_s25, 128  ;;  %s472_s6 = scalar_lea.hbm %s649_s3, 512 }
 0x22b   : > { %p469_p4 = scmp.ne.s32.totalorder %s606_s25, %s468_s30  ;;  %p473_p9 = scmp.lt.u32.totalorder %s606_s25, %s649_s3 }
 0x22c   : > { %p474_p10 = scmp.lt.u32.totalorder %s472_s6, %s468_s30  ;;  %p476_p12 = scmp.lt.u32.totalorder %s468_s30, %s606_s25 }
 0x22d   : > { %p470_p7 = pnand %p469_p4, %p578_p5 }
 0x22e   : > { %p475_p11 = por %p474_p10, %p473_p9 }
 0x22f   : > { %p471_p8 = pneg %p470_p7 }
 0x230   : > { %p477_p13 = por %p476_p12, %p475_p11 }
 0x232   : > { %p478_p0 = pnand %p477_p13, %p471_p8 }
 0x234   : > { %481 = shalt.err (!%p478_p0)
}
 0x235   : > { %404 = dma.vmem_to_hbm [thread:$0]  (%p578_p5), %s601_s11, 128, %s606_s25, %s303_s26  }
 0x236 PF: > { %p410_p1 = scmp.ge.s32.totalorder %s516_s15, 2  ;;  %s328_s9 = sand.u32 1, %s504_s12  }
 0x237   : > { %s329_s10 = scalar_lea.sflag [#allocation3], %s328_s9 }
 0x238   : > { %p407_p2 = pnand %p410_p1, %p582_p6 }
 0x23a   : > { %499 = dma.done.wait (!%p407_p2), %s329_s10, 128  }
 0x23b   : > { %501 = vsyncadd (!%p407_p2), %s329_s10, 4294967168  ;;  %p13_p3 = scmp.ge.s32.totalorder %s565_s18, 6   ;;  %s652_s12 = smov %s508_s13 }
 0x23c   : > { %s653_s13 = smov %s512_s14  ;;  %s654_s14 = smov %s576_s21 }
 0x23d   : > { %s655_s15 = smov %s565_s18  ;;  %15 = sbr.rel (!%p13_p3) target bundleno = 3 (0x3), region = 70 }
 0x244   :  { %334 = vsyncpa [#allocation3], 1 }
 0x245   :  { %336 = vsyncpa [#allocation3 + $0x1], 1 }

</bundles_post_ra>
